<compile_context>
chip_gen: v7x
topology: tpu7x:2x2x1
jax: 0.10.0
libtpu: 0.0.40
codegen_flags: <defaults>
</compile_context>

<pallas_src>
import jax
import jax.numpy as jnp
from jax.experimental import pallas as pl
from jax.experimental.pallas import tpu as pltpu


def _round_up(x: int, m: int) -> int:
    return ((x + m - 1) // m) * m


def _choose_tiling(n_rows: int, tn_target: int):
    """Pick (padded_rows, tile_cols) such that:
       * rows are padded only to a multiple of 128 (no tile-sized padding blowup),
       * the tile divides the padded row count (no ragged boundary block),
       * tile <= tn_target, and the grid has >= 2 steps when there are >= 256 rows
         so both v7x TensorCores get work (harmless on v5e/v6e)."""
    n128 = _round_up(max(n_rows, 1), 128)
    m = n128 // 128
    cap = max(1, min(tn_target // 128, m))
    if m >= 2:
        cap = min(cap, max(1, m // 2))        # ensure grid >= 2 (v7x megacore)
    best = max(d for d in range(1, cap + 1) if m % d == 0)
    if best >= max(1, cap // 4):
        return n128, 128 * best               # exact divisor -> zero extra padding
    # Pathological factorization (e.g. prime m): pad a little further instead of
    # collapsing the tile to 128 and paying the per-grid-step overhead many times.
    tn = 128 * cap
    return _round_up(n128, tn), tn


def reward_mlp_kernel(s_ref, a_ref, w1s_ref, w1a_ref, b1_ref,
                      w2_ref, b2_ref, w3r_ref, b3_ref, o_ref):
    """One column tile; feature-major, rows live on the lane axis.

    s_ref  : (state_dim,  TN)   transposed state rows
    a_ref  : (action_dim, TN)   transposed action rows
    w1s_ref: (s0, state_dim)    first-layer weight, state half (PyTorch (out,in))
    w1a_ref: (s0, action_dim)   first-layer weight, action half
    b1_ref : (s0, 1)            f32
    w2_ref : (s1, s0)
    b2_ref : (s1, 1)            f32
    w3r_ref: (1, s1)            last-layer weight as a row (MXU-friendly)
    b3_ref : (1, 1)             f32
    o_ref  : (1, TN)            sigmoid output, lane-dense
    """
    # ---- Layer 1 on the MXU: h1 = relu(W1s @ s + W1a @ a + b1)   -> (s0, TN)
    h1 = (jnp.dot(w1s_ref[...], s_ref[...], preferred_element_type=jnp.float32)
          + jnp.dot(w1a_ref[...], a_ref[...], preferred_element_type=jnp.float32)
          + b1_ref[...])
    h1 = jnp.maximum(h1, 0.0)

    # ---- Layer 2 on the MXU: h2 = relu(W2 @ h1 + b2)             -> (s1, TN)
    h2 = jnp.dot(w2_ref[...], h1.astype(w2_ref.dtype),
                 preferred_element_type=jnp.float32) + b2_ref[...]
    h2 = jnp.maximum(h2, 0.0)

    # ---- Layer 3 on the MXU: z = w3_row @ h2 + b3                -> (1, TN)
    z = jnp.dot(w3r_ref[...], h2.astype(w3r_ref.dtype),
                preferred_element_type=jnp.float32) + b3_ref[...]

    # sigmoid epilogue: exp (EUP) + approximate reciprocal (EUP slot, ~free).
    o_ref[...] = pl.reciprocal(1.0 + jnp.exp(-z), approx=True).astype(o_ref.dtype)


def synthetic_reward_forward(state, action, params, *, tn_target=8192,
                             compute_dtype=jnp.float32):
    """Pallas implementation of SingleStepSyntheticRewardNet.forward.

    params are in PyTorch nn.Linear layout:
      (W1 (s0, state_dim+action_dim), b1 (s0,), W2 (s1, s0), b2 (s1,), W3 (1, s1), b3 (1,))
    """
    seq_len, batch, state_dim = state.shape
    a_seq, a_batch, action_dim = action.shape
    assert (a_seq, a_batch) == (seq_len, batch)

    w1, b1, w2, b2, w3, b3 = params
    s0 = w1.shape[0]
    s1 = w2.shape[0]
    d_in = state_dim + action_dim
    assert w1.shape == (s0, d_in) and w3.shape == (1, s1)

    f32 = jnp.float32
    # Split W1 so no concatenated (state, action) tensor is ever built in HBM.
    w1s = w1[:, :state_dim].astype(compute_dtype)
    w1a = w1[:, state_dim:].astype(compute_dtype)
    w2c = w2.astype(compute_dtype)
    w3r = w3.reshape(1, s1).astype(compute_dtype)
    b1c = b1.reshape(s0, 1).astype(f32)
    b2c = b2.reshape(s1, 1).astype(f32)
    b3c = b3.reshape(1, 1).astype(f32)

    # Feature-major, rows ordered batch-major (r = b*seq_len + s) so the kernel
    # output is already (batch, seq_len) flattened; features -> sublanes, rows -> lanes.
    # TODO(synk): if the producer can emit feature-major (D, batch*seq) activations,
    # drop this transpose -- it is the largest remaining wrapper-side HBM pass.
    n_rows = seq_len * batch
    sT = jnp.transpose(state, (2, 1, 0)).reshape(state_dim, n_rows).astype(compute_dtype)
    aT = jnp.transpose(action, (2, 1, 0)).reshape(action_dim, n_rows).astype(compute_dtype)

    n_pad, tn = _choose_tiling(n_rows, tn_target)
    if n_pad != n_rows:
        pad = n_pad - n_rows
        sT = jnp.pad(sT, ((0, 0), (0, pad)))
        aT = jnp.pad(aT, ((0, 0), (0, pad)))

    grid = (n_pad // tn,)

    in_bytes = int(sT.dtype.itemsize)
    param_bytes = sum(int(p.size) * int(p.dtype.itemsize)
                      for p in (w1s, w1a, b1c, w2c, b2c, w3r, b3c))
    cost = pl.CostEstimate(
        flops=int(2 * n_pad * (d_in * s0 + s0 * s1 + s1)),
        transcendentals=int(2 * n_pad),
        bytes_accessed=int(in_bytes * n_pad * d_in + 4 * n_pad + param_bytes),
    )

    out = pl.pallas_call(
        reward_mlp_kernel,
        out_shape=jax.ShapeDtypeStruct((1, n_pad), jnp.float32),
        grid_spec=pltpu.PrefetchScalarGridSpec(
            num_scalar_prefetch=0,
            grid=grid,
            in_specs=[
                pl.BlockSpec((state_dim, tn), lambda i: (0, i)),    # state columns
                pl.BlockSpec((action_dim, tn), lambda i: (0, i)),   # action columns
                pl.BlockSpec(w1s.shape, lambda i: (0, 0)),          # resident params
                pl.BlockSpec(w1a.shape, lambda i: (0, 0)),
                pl.BlockSpec(b1c.shape, lambda i: (0, 0)),
                pl.BlockSpec(w2c.shape, lambda i: (0, 0)),
                pl.BlockSpec(b2c.shape, lambda i: (0, 0)),
                pl.BlockSpec(w3r.shape, lambda i: (0, 0)),
                pl.BlockSpec(b3c.shape, lambda i: (0, 0)),
            ],
            out_specs=pl.BlockSpec((1, tn), lambda i: (0, i)),
        ),
        compiler_params=pltpu.CompilerParams(
            dimension_semantics=("parallel",),
            vmem_limit_bytes=32 * 1024 * 1024,
        ),
        cost_estimate=cost,
    )(sT, aT, w1s, w1a, b1c, w2c, b2c, w3r, b3c)

    # Rows are batch-major, so this is directly .squeeze(2).transpose(0, 1).
    return out[0, :n_rows].reshape(batch, seq_len)


def init_params(key, state_dim, action_dim, sizes):
    """Deterministic params in PyTorch nn.Linear layout: W (out, in), b (out,)."""
    dims = [state_dim + action_dim] + list(sizes) + [1]
    params = []
    for idx in range(len(dims) - 1):
        fan_in, fan_out = dims[idx], dims[idx + 1]
        key, kw, kb = jax.random.split(key, 3)
        bound = 1.0 / float(fan_in) ** 0.5
        w = jax.random.uniform(kw, (fan_out, fan_in), jnp.float32, -bound, bound)
        b = jax.random.uniform(kb, (fan_out,), jnp.float32, -bound, bound)
        params += [w, b]
    return tuple(params)


def reference_forward(state, action, params):
    """Pure-JAX reference with identical semantics (validation only)."""
    w1, b1, w2, b2, w3, b3 = params
    x = jnp.concatenate([state, action], axis=-1)
    h = jnp.maximum(x @ w1.T + b1, 0.0)
    h = jnp.maximum(h @ w2.T + b2, 0.0)
    z = jax.nn.sigmoid(h @ w3.T + b3)          # (seq, batch, 1)
    return jnp.squeeze(z, axis=2).transpose(1, 0)


if __name__ == "__main__":
    # SingleStepSyntheticRewardNet(state_dim=4, action_dim=4, sizes=[32, 32],
    #                              activations=["relu", "relu"],
    #                              last_layer_activation="sigmoid")
    seq_len, batch = 8, 2
    state_dim, action_dim = 4, 4
    sizes = [32, 32]

    key = jax.random.PRNGKey(0)
    k_state, k_action, k_params = jax.random.split(key, 3)

    state = jax.random.normal(k_state, (seq_len, batch, state_dim), jnp.float32)
    action = jax.random.normal(k_action, (seq_len, batch, action_dim), jnp.float32)
    params = init_params(k_params, state_dim, action_dim, sizes)

    out = synthetic_reward_forward(state, action, params)
    out = jax.block_until_ready(out)

    ref = reference_forward(state, action, params)
    assert out.shape == (batch, seq_len), out.shape
    # Tolerance loosened slightly for the EUP approximate-reciprocal sigmoid epilogue.
    assert jnp.allclose(out, ref, atol=2e-3, rtol=2e-3)

    print("KERNEL_OK")
</pallas_src>

<mosaic_0001>
module attributes {stable_mosaic.version = 11 : i64} {
  func.func @reward_mlp_kernel(%arg0: i32, %arg1: memref<4x128xf32, #tpu.memory_space<vmem>>, %arg2: memref<4x128xf32, #tpu.memory_space<vmem>>, %arg3: memref<32x4xf32, #tpu.memory_space<vmem>>, %arg4: memref<32x4xf32, #tpu.memory_space<vmem>>, %arg5: memref<32x1xf32, #tpu.memory_space<vmem>>, %arg6: memref<32x32xf32, #tpu.memory_space<vmem>>, %arg7: memref<32x1xf32, #tpu.memory_space<vmem>>, %arg8: memref<1x32xf32, #tpu.memory_space<vmem>>, %arg9: memref<1x1xf32, #tpu.memory_space<vmem>>, %arg10: memref<1x128xf32, #tpu.memory_space<vmem>>) attributes {dimension_semantics = [#tpu.dimension_semantics<parallel>], iteration_bounds = array<i64: 1>, scalar_prefetch = 0 : i64, scratch_operands = 0 : i64, tpu.core_type = #tpu.core_type<tc>, window_params = [{transform_indices = @transform_0, window_bounds = array<i64: 4, 128>}, {transform_indices = @transform_1, window_bounds = array<i64: 4, 128>}, {pipeline_mode = #tpu.pipeline_mode<synchronous>, transform_indices = @transform_2, window_bounds = array<i64: 32, 4>}, {pipeline_mode = #tpu.pipeline_mode<synchronous>, transform_indices = @transform_3, window_bounds = array<i64: 32, 4>}, {pipeline_mode = #tpu.pipeline_mode<synchronous>, transform_indices = @transform_4, window_bounds = array<i64: 32, 1>}, {pipeline_mode = #tpu.pipeline_mode<synchronous>, transform_indices = @transform_5, window_bounds = array<i64: 32, 32>}, {pipeline_mode = #tpu.pipeline_mode<synchronous>, transform_indices = @transform_6, window_bounds = array<i64: 32, 1>}, {pipeline_mode = #tpu.pipeline_mode<synchronous>, transform_indices = @transform_7, window_bounds = array<i64: 1, 32>}, {pipeline_mode = #tpu.pipeline_mode<synchronous>, transform_indices = @transform_8, window_bounds = array<i64: 1, 1>}, {transform_indices = @transform_9, window_bounds = array<i64: 1, 128>}]} {
    %c0 = arith.constant 0 : index
    %c0_0 = arith.constant 0 : index
    %0 = vector.load %arg3[%c0, %c0_0] : memref<32x4xf32, #tpu.memory_space<vmem>>, vector<32x4xf32>
    %c0_1 = arith.constant 0 : index
    %c0_2 = arith.constant 0 : index
    %1 = vector.load %arg1[%c0_1, %c0_2] : memref<4x128xf32, #tpu.memory_space<vmem>>, vector<4x128xf32>
    %cst = arith.constant dense<0.000000e+00> : vector<32x128xf32>
    %2 = tpu.matmul %0, %1, %cst {dimension_numbers = #tpu.dot_dimension_numbers<[1], [0], [0], [1], [0, 0, 1, 1], [], []>} : vector<32x4xf32>, vector<4x128xf32>, vector<32x128xf32> -> vector<32x128xf32>
    %c0_3 = arith.constant 0 : index
    %c0_4 = arith.constant 0 : index
    %3 = vector.load %arg4[%c0_3, %c0_4] : memref<32x4xf32, #tpu.memory_space<vmem>>, vector<32x4xf32>
    %c0_5 = arith.constant 0 : index
    %c0_6 = arith.constant 0 : index
    %4 = vector.load %arg2[%c0_5, %c0_6] : memref<4x128xf32, #tpu.memory_space<vmem>>, vector<4x128xf32>
    %cst_7 = arith.constant dense<0.000000e+00> : vector<32x128xf32>
    %5 = tpu.matmul %3, %4, %cst_7 {dimension_numbers = #tpu.dot_dimension_numbers<[1], [0], [0], [1], [0, 0, 1, 1], [], []>} : vector<32x4xf32>, vector<4x128xf32>, vector<32x128xf32> -> vector<32x128xf32>
    %6 = arith.addf %2, %5 : vector<32x128xf32>
    %c0_8 = arith.constant 0 : index
    %c0_9 = arith.constant 0 : index
    %7 = vector.load %arg5[%c0_8, %c0_9] : memref<32x1xf32, #tpu.memory_space<vmem>>, vector<32x1xf32>
    %8 = vector.broadcast %7 : vector<32x1xf32> to vector<32x128xf32>
    %9 = arith.addf %6, %8 : vector<32x128xf32>
    %cst_10 = arith.constant 0.000000e+00 : f32
    %10 = vector.broadcast %cst_10 : f32 to vector<32x128xf32>
    %11 = arith.maximumf %9, %10 : vector<32x128xf32>
    %c0_11 = arith.constant 0 : index
    %c0_12 = arith.constant 0 : index
    %12 = vector.load %arg6[%c0_11, %c0_12] : memref<32x32xf32, #tpu.memory_space<vmem>>, vector<32x32xf32>
    %cst_13 = arith.constant dense<0.000000e+00> : vector<32x128xf32>
    %13 = tpu.matmul %12, %11, %cst_13 {dimension_numbers = #tpu.dot_dimension_numbers<[1], [0], [0], [1], [0, 0, 1, 1], [], []>} : vector<32x32xf32>, vector<32x128xf32>, vector<32x128xf32> -> vector<32x128xf32>
    %c0_14 = arith.constant 0 : index
    %c0_15 = arith.constant 0 : index
    %14 = vector.load %arg7[%c0_14, %c0_15] : memref<32x1xf32, #tpu.memory_space<vmem>>, vector<32x1xf32>
    %15 = vector.broadcast %14 : vector<32x1xf32> to vector<32x128xf32>
    %16 = arith.addf %13, %15 : vector<32x128xf32>
    %cst_16 = arith.constant 0.000000e+00 : f32
    %17 = vector.broadcast %cst_16 : f32 to vector<32x128xf32>
    %18 = arith.maximumf %16, %17 : vector<32x128xf32>
    %c0_17 = arith.constant 0 : index
    %c0_18 = arith.constant 0 : index
    %19 = vector.load %arg8[%c0_17, %c0_18] : memref<1x32xf32, #tpu.memory_space<vmem>>, vector<1x32xf32>
    %cst_19 = arith.constant dense<0.000000e+00> : vector<1x128xf32>
    %20 = tpu.matmul %19, %18, %cst_19 {dimension_numbers = #tpu.dot_dimension_numbers<[1], [0], [0], [1], [0, 0, 1, 1], [], []>} : vector<1x32xf32>, vector<32x128xf32>, vector<1x128xf32> -> vector<1x128xf32>
    %c0_20 = arith.constant 0 : index
    %c0_21 = arith.constant 0 : index
    %21 = vector.load %arg9[%c0_20, %c0_21] : memref<1x1xf32, #tpu.memory_space<vmem>>, vector<1x1xf32>
    %22 = vector.broadcast %21 : vector<1x1xf32> to vector<1x128xf32>
    %23 = arith.addf %20, %22 : vector<1x128xf32>
    %cst_22 = arith.constant 0.000000e+00 : f32
    %24 = vector.broadcast %cst_22 : f32 to vector<1x128xf32>
    %25 = arith.subf %24, %23 : vector<1x128xf32>
    %26 = math.exp %25 : vector<1x128xf32>
    %cst_23 = arith.constant 1.000000e+00 : f32
    %27 = vector.broadcast %cst_23 : f32 to vector<1x128xf32>
    %28 = arith.addf %27, %26 : vector<1x128xf32>
    %29 = tpu.reciprocal %28 {approx = true} : vector<1x128xf32> -> vector<1x128xf32>
    %c0_24 = arith.constant 0 : index
    %c0_25 = arith.constant 0 : index
    %30 = vector.load %arg10[%c0_24, %c0_25] : memref<1x128xf32, #tpu.memory_space<vmem>>, vector<1x128xf32>
    tpu.vector_store %arg10[%c0_24, %c0_25], %29 {strides = array<i32>} : memref<1x128xf32, #tpu.memory_space<vmem>>, vector<1x128xf32>,
    return
  }
  func.func @transform_0(%arg0: i32) -> (i32, i32) {
    %c0_i32 = arith.constant 0 : i32
    %c0_i32_0 = arith.constant 0 : i32
    return %c0_i32, %arg0 : i32, i32
  }
  func.func @transform_1(%arg0: i32) -> (i32, i32) {
    %c0_i32 = arith.constant 0 : i32
    %c0_i32_0 = arith.constant 0 : i32
    return %c0_i32, %arg0 : i32, i32
  }
  func.func @transform_2(%arg0: i32) -> (i32, i32) {
    %c0_i32 = arith.constant 0 : i32
    %c0_i32_0 = arith.constant 0 : i32
    %c0_i32_1 = arith.constant 0 : i32
    return %c0_i32, %c0_i32_0 : i32, i32
  }
  func.func @transform_3(%arg0: i32) -> (i32, i32) {
    %c0_i32 = arith.constant 0 : i32
    %c0_i32_0 = arith.constant 0 : i32
    %c0_i32_1 = arith.constant 0 : i32
    return %c0_i32, %c0_i32_0 : i32, i32
  }
  func.func @transform_4(%arg0: i32) -> (i32, i32) {
    %c0_i32 = arith.constant 0 : i32
    %c0_i32_0 = arith.constant 0 : i32
    %c0_i32_1 = arith.constant 0 : i32
    return %c0_i32, %c0_i32_0 : i32, i32
  }
  func.func @transform_5(%arg0: i32) -> (i32, i32) {
    %c0_i32 = arith.constant 0 : i32
    %c0_i32_0 = arith.constant 0 : i32
    %c0_i32_1 = arith.constant 0 : i32
    return %c0_i32, %c0_i32_0 : i32, i32
  }
  func.func @transform_6(%arg0: i32) -> (i32, i32) {
    %c0_i32 = arith.constant 0 : i32
    %c0_i32_0 = arith.constant 0 : i32
    %c0_i32_1 = arith.constant 0 : i32
    return %c0_i32, %c0_i32_0 : i32, i32
  }
  func.func @transform_7(%arg0: i32) -> (i32, i32) {
    %c0_i32 = arith.constant 0 : i32
    %c0_i32_0 = arith.constant 0 : i32
    %c0_i32_1 = arith.constant 0 : i32
    return %c0_i32, %c0_i32_0 : i32, i32
  }
  func.func @transform_8(%arg0: i32) -> (i32, i32) {
    %c0_i32 = arith.constant 0 : i32
    %c0_i32_0 = arith.constant 0 : i32
    %c0_i32_1 = arith.constant 0 : i32
    return %c0_i32, %c0_i32_0 : i32, i32
  }
  func.func @transform_9(%arg0: i32) -> (i32, i32) {
    %c0_i32 = arith.constant 0 : i32
    %c0_i32_0 = arith.constant 0 : i32
    return %c0_i32, %arg0 : i32, i32
  }
}

</mosaic_0001>

<bundles_post_ra>
// kernel: tpu_custom_call.1
= control target key start
LH: loop header
LB: loop body
LE: loop exit
PB: predicated region body
PF: predicated region fallthrough
CT: control target
= control target key end

     0   :  { %s797_s0 = inlined_call_operand.vmem [shape: f32[4,128], index: 0, kind: input, shape index: {}]   ;;  %s798_s1 = inlined_call_operand.vmem [shape: f32[4,128], index: 1, kind: input, shape index: {}]   ;;  %s799_s2 = inlined_call_operand.vmem [shape: f32[32,4], index: 2, kind: input, shape index: {}]   ;;  %s800_s3 = inlined_call_operand.vmem [shape: f32[32,4], index: 3, kind: input, shape index: {}]   ;;  %s801_s4 = inlined_call_operand.vmem [shape: f32[32,1], index: 4, kind: input, shape index: {}]   ;;  %s802_s5 = inlined_call_operand.vmem [shape: f32[32,32], index: 5, kind: input, shape index: {}]   ;;  %s803_s6 = inlined_call_operand.vmem [shape: f32[32,1], index: 6, kind: input, shape index: {}]   ;;  %s804_s7 = inlined_call_operand.vmem [shape: f32[1,32], index: 7, kind: input, shape index: {}]   ;;  %s805_s8 = inlined_call_operand.<no memory space> [shape: f32[1,1], index: 8, kind: input, shape index: {}]   ;;  %s806_s9 = inlined_call_operand.hbm [shape: f32[1,128], index: 9, kind: output, shape index: {}]  }
   0x1   :  { %v14_v0 = vstv %s805_s8 }
   0x2   :  { %15 = vst [vmem:[#allocation2] sm:$0x1] %v14_v0 }
   0x3   :  { %v44_v1 = vld [vmem:[%s798_s1] sm:$0xf]  ;;  %vm58_vm0 = vcmask 1043456   ;;  %vm45_vm1 = vcmask 31744   ;;  %v41_v3 = vld [vmem:[%s800_s3 + $0x8] sm:$0xff]  ;;  %v42_v5 = vld [vmem:[%s800_s3 + $0x10] sm:$0xff] }
   0x4   :  { %v40_v2 = vld [vmem:[%s800_s3] sm:$0xff]  ;;  %551 = vmatprep.subr.msk.mxu0 %vm58_vm0, %v44_v1  ;;  %v645_v6 = vmov 0   ;;  %v43_v8 = vld [vmem:[%s800_s3 + $0x18] sm:$0xff]  ;;  %v249_v9 = vld [vmem:[%s801_s4 + $0x10] sm:$0xff] }
   0x5   :  { %553 = vmatprep.mubr.msk.f32.mxu0 %vm45_vm1, %v40_v2  ;;  %v39_v4 = vld [vmem:[%s797_s0] sm:$0xf]  ;;  %552 = vmatpush3.msk.msra.mxu0 %vm58_vm0, %v44_v1  ;;  %v248_v11 = vld [vmem:[%s801_s4 + $0x8] sm:$0xff] }
   0x6   :  { %615 = vset.pattern.permute.xlu0 %v645_v6  ;;  %554 = vmatmul.mubr.msk.f32.vlgmr.msra.gmra.mrb[0].mxu0 %vm45_vm1, %v41_v3  ;;  %v247_v7 = vld [vmem:[%s801_s4] sm:$0xff] }
   0x7   :  { %559 = vmatprep.subr.msk.mxu0 %vm58_vm0, %v39_v4  ;;  %556 = vmatprep.mubr.msk.f32.mxu0 %vm45_vm1, %v42_v5  ;;  %v35_v10 = vld [vmem:[%s799_s2] sm:$0xff] }
   0x8   :  { %560 = vmatpush3.msk.msra.mxu0 %vm58_vm0, %v39_v4  ;;  %253 = vperm.xlu0 %615, %v247_v7  }
   0x9   :  { %616 = vset.pattern.permute.xlu1 %v645_v6 }
   0xa   :  { %263 = vperm.xlu1 %616, %v249_v9  }
   0xb   :  { %16 = vsyncpa [#allocation4], 0  ;;  %557 = vmatmul.mubr.msk.f32.gmra.mrb[2].mxu0 %vm45_vm1, %v43_v8  ;;  %v250_v12 = vld [vmem:[%s801_s4 + $0x18] sm:$0xff]  ;;  %v36_v13 = vld [vmem:[%s799_s2 + $0x8] sm:$0xff]  ;;  %vm307_vm2 = vcmask 261120   ;;  %v646_v43 = vmov 0.0|0.0   ;;  %v416_v0 = vlaneseq }
   0xc   :  { %561 = vmatprep.mubr.msk.f32.mxu0 %vm45_vm1, %v35_v10  ;;  %v37_v14 = vld [vmem:[%s799_s2 + $0x10] sm:$0xff]  ;;  %258 = vperm.xlu0 %615, %v248_v11   ;;  %v283_v15 = vld [vmem:[%s803_s6] sm:$0xff]  ;;  %v284_v16 = vld [vmem:[%s803_s6 + $0x8] sm:$0xff]  ;;  %vm647_vm3 = vmmov 0   ;;  %v648_v44 = vmov 0.0   ;;  %s649_s25 = smov [#allocation3]  }
   0xd   :  { %v38_v17 = vld [vmem:[%s799_s2 + $0x18] sm:$0xff]  ;;  %v285_v18 = vld [vmem:[%s803_s6 + $0x10] sm:$0xff]  ;;  %v410_v20 = vld [vmem:[#allocation2] sm:$0x1]  ;;  %v417_v1 = vshrl.u32 %v416_v0, 7  ;;  %s505_s26 = sshll.u32 %s649_s25, 4  ;;  %s506_s26 = int_to_ptr.vmem [resolvable:$true] %s505_s26 }
   0xe   :  { %268 = vperm.xlu1 %616, %v250_v12   ;;  %v286_v19 = vld [vmem:[%s803_s6 + $0x18] sm:$0xff]  ;;  %v279_v21 = vld [vmem:[%s802_s5] sm:$0xff]  ;;  %v280_v40 = vld [vmem:[%s802_s5 + $0x8] sm:$0xff]  ;;  %s625_s27 = scalar_lea.vmem %s506_s26, 32  ;;  %p626_p1 = scmp.lt.s32.totalorder %s506_s26, %s506_s26 }
   0xf   :  { %562 = vmatmul.mubr.msk.f32.vlgmr.msra.gmra.mrb[0].mxu0 %vm45_vm1, %v36_v13  ;;  %575 = vmatprep.mubr.msk.f32.mxu1 %vm307_vm2, %v279_v21  ;;  %v281_v41 = vld [vmem:[%s802_s5 + $0x10] sm:$0xff]  ;;  %v282_v42 = vld [vmem:[%s802_s5 + $0x18] sm:$0xff]  ;;  %v409_v63 = vld [vmem:[%s804_s7] sm:$0x1]  ;;  %v418_v2 = vsub.s32 0, %v417_v1  ;;  %s621_s7 = scalar_lea.vmem %s506_s26, 16 }
  0x10   :  { %564 = vmatprep.mubr.msk.f32.mxu0 %vm45_vm1, %v37_v14  ;;  %289 = vperm.xlu0 %615, %v283_v15   ;;  %p622_p0 = scmp.ne.s32.totalorder %s506_s26, %s621_s7  ;;  %p627_p2 = scmp.lt.s32.totalorder %s625_s27, %s621_s7 }
  0x12   :  { %294 = vperm.xlu1 %616, %v284_v16   ;;  %p628_p3 = por %p627_p2, %p626_p1 }
  0x13   :  { %565 = vmatmul.mubr.msk.f32.gmra.mrb[2].mxu0 %vm45_vm1, %v38_v17 }
  0x14   :  { %299 = vperm.xlu0 %615, %v285_v18   ;;  %p629_p4 = pnand %p628_p3, %p622_p0 }
  0x16   :  { %304 = vperm.xlu1 %616, %v286_v19  }
  0x18   :  { %413 = vperm.xlu0 %615, %v410_v20  }
  0x87   :  { %v254_v22 = vpop.permute.xlu0 %253 }
  0x89   :  { %v264_v23 = vpop.permute.xlu1 %263 }
  0x8b   :  { %v259_v24 = vpop.permute.xlu0 %258 }
  0x8d   :  { %v269_v30 = vpop.permute.xlu1 %268 }
  0x8f   :  { %v290_v46 = vpop.permute.xlu0 %289 }
  0x91   :  { %v295_v45 = vpop.permute.xlu1 %294 }
  0x93   :  { %v300_v55 = vpop.permute.xlu0 %299 }
  0x95   :  { %v305_v52 = vpop.permute.xlu1 %304 }
  0x97   :  { %v414_v3 = vpop.permute.xlu0 %413 }
  0x98   :  { %v419_v4 = vrot.slane %v414_v3, %v418_v2 }
  0xe2   :  { %v563_v25 = vpop.f32.mrb[0].mxu0 }
  0xe3   :  { %v272_v26 = vadd.f32 %v563_v25, %v259_v24  ;;  %v228_v27 = vpop.f32.mrb[1].mxu0 }
  0xe4   :  { %v271_v28 = vadd.f32 %v254_v22, %v228_v27 }
  0xe5   :  { %v276_v29 = vmax.f32 %v272_v26, 0.0 }
  0xe6   :  { %v275_v31 = vmax.f32 %v271_v28, 0.0  ;;  %v566_v32 = vpop.f32.mrb[2].mxu0 }
  0xe7   :  { %v274_v33 = vadd.f32 %v566_v32, %v269_v30  ;;  %v238_v34 = vpop.f32.mrb[3].mxu0 }
  0xe8   :  { %v273_v35 = vadd.f32 %v264_v23, %v238_v34  ;;  %v592_v36 = vpack.c.bf16 %v276_v29, %v275_v31 }
  0xe9   :  { %v278_v37 = vmax.f32 %v274_v33, 0.0 }
  0xea   :  { %v277_v38 = vmax.f32 %v273_v35, 0.0  ;;  %593 = vmatprep.subr.bf16.mxu1 %v592_v36 }
  0xeb   :  { %595 = vmatpush3.bf16.msra.mxu1 %v592_v36 }
  0xec   :  { %v596_v39 = vpack.c.bf16 %v278_v37, %v277_v38 }
  0xee   :  { %597 = vmatprep.subr.bf16.mxu1 %v596_v39 }
  0xef   :  { %599 = vmatpush3.bf16.msra.mxu1 %v596_v39 }
  0xf0   :  { %600 = vmatprep.subr.bf16.mxu1 %v646_v43 }
  0xf2   :  { %576 = vmatmul.mubr.msk.f32.vlgmr.msra.gmra.mrb[0].mxu1 %vm307_vm2, %v280_v40 }
  0xf3   :  { %578 = vmatprep.mubr.msk.f32.mxu1 %vm307_vm2, %v281_v41 }
  0xf6   :  { %579 = vmatmul.mubr.msk.f32.gmra.mrb[2].mxu1 %vm307_vm2, %v282_v42 }
  0xf7   :  { %589 = vmatprep.mubr.msk.f32.mxu1 %vm647_vm3, %v648_v44 }
 0x1c5   :  { %v577_v47 = vpop.f32.mrb[0].mxu1 }
 0x1c6   :  { %v392_v48 = vadd.f32 %v577_v47, %v295_v45  ;;  %v386_v49 = vpop.f32.mrb[1].mxu1 }
 0x1c7   :  { %v387_v50 = vadd.f32 %v386_v49, %v290_v46 }
 0x1c8   :  { %v406_v51 = vmax.f32 %v392_v48, 0.0 }
 0x1c9   :  { %v405_v53 = vmax.f32 %v387_v50, 0.0  ;;  %v580_v54 = vpop.f32.mrb[2].mxu1 }
 0x1ca   :  { %v402_v56 = vadd.f32 %v580_v54, %v305_v52  ;;  %v396_v57 = vpop.f32.mrb[3].mxu1 }
 0x1cb   :  { %v601_v58 = vpack.c.bf16 %v406_v51, %v405_v53  ;;  %v397_v59 = vadd.f32 %v396_v57, %v300_v55 }
 0x1cc   :  { %v408_v60 = vmax.f32 %v402_v56, 0.0 }
 0x1cd   :  { %v407_v61 = vmax.f32 %v397_v59, 0.0  ;;  %602 = vmatpush3.bf16.msra.mxu1 %v601_v58 }
 0x1ce   :  { %603 = vmatprep.subr.bf16.mxu1 %v646_v43 }
 0x1cf   :  { %v604_v62 = vpack.c.bf16 %v408_v60, %v407_v61 }
 0x1d1   :  { %605 = vmatpush3.bf16.msra.mxu1 %v604_v62 }
 0x1d4   :  { %590 = vmatmul.mubr.msk.f32.vlgmr.msra.gmra.mrb[4].mxu1 %vm307_vm2, %v409_v63 }
 0x2a7   :  { %v489_v5 = vpop.f32.mrb[4].mxu1 }
 0x2a8   :  { %v490_v6 = vadd.f32 %v489_v5, %v419_v4  ;;  %v591_v7 = vpop.f32.mrb[5].mxu1 }
 0x2aa   :  { %v493_v8 = vsub.f32 0.0, %v490_v6 }
 0x2ac   :  { %v494_v9 = vmul.f32 1.442695, %v493_v8 }
 0x2ae   :  { %617 = vpow2.f32 %v494_v9 }
 0x2b8   :  { %v618_v10 = vpop.eup %617 }
 0x2b9   :  { %v496_v11 = vadd.f32 1.0, %v618_v10 }
 0x2bb   :  { %619 = vrcp.f32 %v496_v11 }
 0x2c5   :  { %v620_v12 = vpop.eup %619 }
 0x2c6   :  { %498 = vst [vmem:[#allocation3] sm:$0x1] %v620_v12 }
 0x2c7   :  { %632 = shalt.err (!%p629_p4)
}
 0x2c8   :  { %s633_s29 = scalar_lea.hbm %s806_s9, 16 }
 0x2c9   :  { %p634_p5 = scmp.ne.s32.totalorder %s806_s9, %s633_s29  ;;  %p637_p6 = scmp.lt.u32.totalorder %s633_s29, %s806_s9 }
 0x2cb   :  { %p639_p7 = pnand %p637_p6, %p634_p5 }
 0x2cd   :  { %642 = shalt.err (!%p639_p7)
}
 0x2ce   :  { %508 = dma.vmem_to_hbm [thread:$0]  %s506_s26, 16, %s806_s9, [#allocation4]  }
 0x2cf   :  { %643 = dma.done.wait [#allocation4], 16  }
 0x2d0   :  { %644 = vsyncadd [#allocation4], 4294967280 }
 0x2d1   :  { %512 = vsyncpa [#allocation4], 1 }

</bundles_post_ra>
